<compile_context>
chip_gen: v6e
topology: v6e:2x2x1
jax: 0.10.0
libtpu: 0.0.40
codegen_flags: <defaults>
</compile_context>

<pallas_src>
import functools

import jax
import jax.numpy as jnp
from jax.experimental import pallas as pl
from jax.experimental.pallas import tpu as pltpu

NUM_CLASSES = 41
IGNORE_INDEX = 255


def _ce_kernel(logits_ref, labels_ref, weight_ref, loss_ref, wsum_ref,
               loss_acc, w_acc, *, hw, tile, tiles_per_chunk, mask_tail):
    """Weighted softmax cross-entropy, class-on-sublane layout.

    logits_ref: (C, TW)   classes on sublanes, pixels on lanes
    labels_ref: (1, TW)   int32
    weight_ref: (C, 1)    f32 (resident across the whole grid)
    loss_ref / wsum_ref: (1, 1) per-(image, chunk) partial sums (written last tile)
    loss_acc / w_acc:    (1, TW) lane-dense VMEM accumulators
    """
    t = pl.program_id(2)

    @pl.when(t == 0)
    def _init():
        loss_acc[...] = jnp.zeros_like(loss_acc)
        w_acc[...] = jnp.zeros_like(w_acc)

    x = logits_ref[...].astype(jnp.float32)          # (C, TW)
    y = labels_ref[...]                              # (1, TW) int32
    w = weight_ref[...].astype(jnp.float32)          # (C, 1)

    # Numerically stable LSE over the class (sublane) axis, kept in shifted form.
    col_max = jnp.max(x, axis=0, keepdims=True)      # (1, TW)
    xs = x - col_max                                 # (C, TW)
    lse_s = jnp.log(jnp.sum(jnp.exp(xs), axis=0, keepdims=True))   # (1, TW)

    # Select-based gather of the target logit / per-pixel class weight.
    # Labels outside [0, C) (ignore_index=255, garbage tail) match no class, so
    # px_w is 0 there.  (lse - tgt) == (lse_s - tgt_s) whenever the label hits a
    # class (the col_max terms cancel).
    eq = jax.lax.broadcasted_iota(jnp.int32, x.shape, 0) == y       # (C, TW) bool
    tgt_s = jnp.sum(jnp.where(eq, xs, 0.0), axis=0, keepdims=True)  # (1, TW)
    px_w = jnp.sum(jnp.where(eq, w, 0.0), axis=0, keepdims=True)    # (1, TW)

    contrib = (lse_s - tgt_s) * px_w                 # (1, TW)

    if mask_tail:
        # Ragged last tile: out-of-bounds lanes hold garbage (possibly inf/NaN),
        # so explicitly select them to zero instead of relying on *0.
        base = (pl.program_id(1) * tiles_per_chunk + t) * tile
        lane = jax.lax.broadcasted_iota(jnp.int32, (1, tile), 1)
        valid = (lane + base) < hw
        contrib = jnp.where(valid, contrib, 0.0)
        px_w = jnp.where(valid, px_w, 0.0)

    loss_acc[...] += contrib
    w_acc[...] += px_w

    @pl.when(t == pl.num_programs(2) - 1)
    def _finalize():
        loss_ref[...] = jnp.sum(loss_acc[...]).reshape(1, 1)
        wsum_ref[...] = jnp.sum(w_acc[...]).reshape(1, 1)


def _round_up(x, m):
    return ((x + m - 1) // m) * m


def _pick_tile(hw, max_tile=32768, min_tile=1024):
    """Largest lane-aligned spatial tile <= max_tile; prefer one that divides the
    128-padded spatial extent (minimizes wasted lanes in the ragged last tile)."""
    hw128 = _round_up(hw, 128)
    if hw128 <= max_tile:
        return hw128
    for t in range(max_tile, min_tile - 1, -128):
        if hw128 % t == 0:
            return t
    return max_tile


def _weighted_ce_pallas(pred_flat, labels_flat, weight, *, max_tile=32768):
    """pred_flat: (N, C, HW), labels_flat: (N, 1, HW) int, weight: (C,) -> scalar."""
    n, c, hw = pred_flat.shape
    tile = _pick_tile(hw, max_tile)
    n_tiles = pl.cdiv(hw, tile)
    # Split the spatial axis into 2 parallel chunks when possible so that both
    # v7x TensorCores get work even for N == 1 (per-chunk partial outputs).
    n_chunks = 2 if (n_tiles >= 2 and n_tiles % 2 == 0) else 1
    tpc = n_tiles // n_chunks
    mask_tail = (n_tiles * tile != hw)

    weight2d = weight.reshape(c, 1).astype(jnp.float32)

    # VMEM budget: double-buffered logits + labels blocks + lane-dense scratch.
    c_pad = _round_up(c, 8)
    work_bytes = 2 * (c_pad * tile * 4 + tile * 4) + 2 * tile * 4
    vmem_limit = int(work_bytes + (8 << 20))

    kernel = functools.partial(_ce_kernel, hw=hw, tile=tile,
                               tiles_per_chunk=tpc, mask_tail=mask_tail)

    loss_parts, w_parts = pl.pallas_call(
        kernel,
        out_shape=(
            jax.ShapeDtypeStruct((n, n_chunks, 1, 1), jnp.float32),
            jax.ShapeDtypeStruct((n, n_chunks, 1, 1), jnp.float32),
        ),
        grid_spec=pltpu.PrefetchScalarGridSpec(
            num_scalar_prefetch=0,
            grid=(n, n_chunks, tpc),
            in_specs=[
                pl.BlockSpec((None, c, tile), lambda i, j, t: (i, 0, j * tpc + t)),
                pl.BlockSpec((None, 1, tile), lambda i, j, t: (i, 0, j * tpc + t)),
                pl.BlockSpec((c, 1), lambda i, j, t: (0, 0)),
            ],
            out_specs=(
                pl.BlockSpec((None, None, 1, 1), lambda i, j, t: (i, j, 0, 0)),
                pl.BlockSpec((None, None, 1, 1), lambda i, j, t: (i, j, 0, 0)),
            ),
            scratch_shapes=[
                pltpu.VMEM((1, tile), jnp.float32),
                pltpu.VMEM((1, tile), jnp.float32),
            ],
        ),
        compiler_params=pltpu.CompilerParams(
            dimension_semantics=("parallel", "parallel", "arbitrary"),
            vmem_limit_bytes=vmem_limit,
        ),
    )(pred_flat, labels_flat.astype(jnp.int32), weight2d)

    # NaN if every pixel is ignore_index — same as PyTorch's weighted-mean CE.
    return jnp.sum(loss_parts) / jnp.sum(w_parts)


def _nearest_resize_nchw(x, out_hw):
    """PyTorch F.interpolate(mode='nearest') semantics: src = floor(dst * in/out).
    Single fused advanced-index gather (no (N,C,H,Wl) intermediate)."""
    n, ch, in_h, in_w = x.shape
    out_h, out_w = out_hw
    h_idx = jnp.floor(jnp.arange(out_h) * (in_h / out_h)).astype(jnp.int32)
    w_idx = jnp.floor(jnp.arange(out_w) * (in_w / out_w)).astype(jnp.int32)
    return x[:, :, h_idx[:, None], w_idx[None, :]]


@jax.jit
def seg_cross_entropy_loss(pred, label, weight):
    """pred: (N, C, H, W) logits (f32 or bf16), label: (N, 3, Hl, Wl), weight: (C,)."""
    n, c, h, w = pred.shape

    # Keep pred in native NCHW; (N, C, H*W) is a free reshape (no transpose pass).
    pred_flat = pred.reshape(n, c, h * w)

    # label, _, _ = torch.chunk(label, 3, dim=1) -> first third of channels
    chunk = label.shape[1] // 3
    label0 = label[:, :chunk]

    # gt = F.interpolate(label.float(), size=(H, W))   (nearest)
    gt = _nearest_resize_nchw(label0.astype(jnp.float32), (h, w))

    # gt.long(), flattened per-image in (h, w) row-major order (matches NCHW pixels)
    gt_flat = gt[:, :1].astype(jnp.int32).reshape(n, 1, h * w)

    return _weighted_ce_pallas(pred_flat, gt_flat, weight)


def _reference_ce(pred_flat, labels_flat, weight):
    """Pure-JAX weighted CE with ignore_index, on (N,C,HW) / (N,1,HW) inputs."""
    n, c, hw = pred_flat.shape
    logits = jnp.transpose(pred_flat, (0, 2, 1)).reshape(-1, c).astype(jnp.float32)
    labels = labels_flat.reshape(-1).astype(jnp.int32)
    valid = (labels >= 0) & (labels < c)
    safe = jnp.where(valid, labels, 0)
    logp = jax.nn.log_softmax(logits, axis=-1)
    nll = -jnp.take_along_axis(logp, safe[:, None], axis=-1)[:, 0]
    wv = weight[safe] * valid
    return jnp.sum(nll * wv) / jnp.sum(wv)


if __name__ == "__main__":
    key = jax.random.PRNGKey(0)
    k_pred, k_lab, k_ign, k_pred2, k_lab2, k_ign2 = jax.random.split(key, 6)

    # ---- Test A: full module path (NCHW logits + 3-chunk label + nearest resize)
    N, C, H, W = 2, NUM_CLASSES, 16, 16
    LH, LW = 32, 32  # label spatial size (nearest-resized down to H, W)

    pred = jax.random.normal(k_pred, (N, C, H, W), dtype=jnp.float32)

    lab_vals = jax.random.randint(k_lab, (N, 1, LH, LW), 0, NUM_CLASSES)
    ignore_mask = jax.random.bernoulli(k_ign, 0.05, (N, 1, LH, LW))
    lab_vals = jnp.where(ignore_mask, IGNORE_INDEX, lab_vals)
    label = jnp.concatenate(
        [lab_vals, jnp.zeros_like(lab_vals), jnp.zeros_like(lab_vals)], axis=1
    ).astype(jnp.float32)  # (N, 3, LH, LW)

    # NYU weights: ones, weight[0] = 0.1
    weight = jnp.ones((NUM_CLASSES,), jnp.float32).at[0].set(0.1)

    loss = seg_cross_entropy_loss(pred, label, weight)
    loss = jax.block_until_ready(loss)

    gt = _nearest_resize_nchw(label[:, :1], (H, W))
    gt_flat = gt.astype(jnp.int32).reshape(N, 1, H * W)
    ref = _reference_ce(pred.reshape(N, C, H * W), gt_flat, weight)
    assert jnp.allclose(loss, ref, rtol=1e-5, atol=1e-5), (loss, ref)

    # ---- Test B: ragged-tail + multi-tile + 2-chunk path (no padding anywhere)
    HW2 = 130  # not a multiple of 128 -> masked ragged last tile; 2 tiles -> 2 chunks
    pred2 = jax.random.normal(k_pred2, (1, NUM_CLASSES, HW2), dtype=jnp.float32)
    lab2 = jax.random.randint(k_lab2, (1, 1, HW2), 0, NUM_CLASSES)
    ign2 = jax.random.bernoulli(k_ign2, 0.05, (1, 1, HW2))
    lab2 = jnp.where(ign2, IGNORE_INDEX, lab2).astype(jnp.int32)

    loss2 = _weighted_ce_pallas(pred2, lab2, weight, max_tile=128)
    loss2 = jax.block_until_ready(loss2)
    ref2 = _reference_ce(pred2, lab2, weight)
    assert jnp.allclose(loss2, ref2, rtol=1e-5, atol=1e-5), (loss2, ref2)

    print("KERNEL_OK")
</pallas_src>

<mosaic_0001>
module attributes {stable_mosaic.version = 11 : i64} {
  func.func @_ce_kernel(%arg0: i32, %arg1: i32, %arg2: i32, %arg3: memref<1x41x256xf32, #tpu.memory_space<vmem>>, %arg4: memref<1x1x256xi32, #tpu.memory_space<vmem>>, %arg5: memref<41x1xf32, #tpu.memory_space<vmem>>, %arg6: memref<1x1x1x1xf32, #tpu.memory_space<vmem>>, %arg7: memref<1x1x1x1xf32, #tpu.memory_space<vmem>>, %arg8: memref<1x256xf32, #tpu.memory_space<vmem>>, %arg9: memref<1x256xf32, #tpu.memory_space<vmem>>) attributes {dimension_semantics = [#tpu.dimension_semantics<parallel>, #tpu.dimension_semantics<parallel>, #tpu.dimension_semantics<arbitrary>], iteration_bounds = array<i64: 2, 1, 1>, scalar_prefetch = 0 : i64, scratch_operands = 2 : i64, tpu.core_type = #tpu.core_type<tc>, window_params = [{transform_indices = @transform_0, window_bounds = array<i64: 1, 41, 256>}, {transform_indices = @transform_1, window_bounds = array<i64: 1, 1, 256>}, {pipeline_mode = #tpu.pipeline_mode<synchronous>, transform_indices = @transform_2, window_bounds = array<i64: 41, 1>}, {transform_indices = @transform_3, window_bounds = array<i64: 1, 1, 1, 1>}, {transform_indices = @transform_4, window_bounds = array<i64: 1, 1, 1, 1>}]} {
    %c0_i32 = arith.constant 0 : i32
    %0 = arith.cmpi eq, %arg2, %c0_i32 : i32
    %1 = arith.extui %0 : i1 to i32
    %c0_i32_0 = arith.constant 0 : i32
    %2 = arith.cmpi ne, %1, %c0_i32_0 : i32
    scf.if %2 {
      %cst_23 = arith.constant 0.000000e+00 : f32
      %40 = vector.broadcast %cst_23 : f32 to vector<1x256xf32>
      %c0_24 = arith.constant 0 : index
      %c0_25 = arith.constant 0 : index
      %41 = vector.load %arg8[%c0_24, %c0_25] : memref<1x256xf32, #tpu.memory_space<vmem>>, vector<1x256xf32>
      tpu.vector_store %arg8[%c0_24, %c0_25], %40 {strides = array<i32>} : memref<1x256xf32, #tpu.memory_space<vmem>>, vector<1x256xf32>,
      %cst_26 = arith.constant 0.000000e+00 : f32
      %42 = vector.broadcast %cst_26 : f32 to vector<1x256xf32>
      %c0_27 = arith.constant 0 : index
      %c0_28 = arith.constant 0 : index
      %43 = vector.load %arg9[%c0_27, %c0_28] : memref<1x256xf32, #tpu.memory_space<vmem>>, vector<1x256xf32>
      tpu.vector_store %arg9[%c0_27, %c0_28], %42 {strides = array<i32>} : memref<1x256xf32, #tpu.memory_space<vmem>>, vector<1x256xf32>,
    } else {
    }
    %c0 = arith.constant 0 : index
    %c0_1 = arith.constant 0 : index
    %c0_2 = arith.constant 0 : index
    %3 = vector.load %arg3[%c0, %c0_1, %c0_2] : memref<1x41x256xf32, #tpu.memory_space<vmem>>, vector<1x41x256xf32>
    %4 = vector.shape_cast %3 : vector<1x41x256xf32> to vector<41x256xf32>
    %c0_3 = arith.constant 0 : index
    %c0_4 = arith.constant 0 : index
    %c0_5 = arith.constant 0 : index
    %5 = vector.load %arg4[%c0_3, %c0_4, %c0_5] : memref<1x1x256xi32, #tpu.memory_space<vmem>>, vector<1x1x256xi32>
    %6 = vector.shape_cast %5 : vector<1x1x256xi32> to vector<1x256xi32>
    %c0_6 = arith.constant 0 : index
    %c0_7 = arith.constant 0 : index
    %7 = vector.load %arg5[%c0_6, %c0_7] : memref<41x1xf32, #tpu.memory_space<vmem>>, vector<41x1xf32>
    %cst = arith.constant dense<0xFF800000> : vector<256xf32>
    %8 = vector.multi_reduction <maximumf>, %4, %cst [0] : vector<41x256xf32> to vector<256xf32>
    %9 = vector.shape_cast %8 : vector<256xf32> to vector<1x256xf32>
    %10 = vector.broadcast %9 : vector<1x256xf32> to vector<41x256xf32>
    %11 = arith.subf %4, %10 : vector<41x256xf32>
    %12 = math.exp %11 : vector<41x256xf32>
    %cst_8 = arith.constant dense<0.000000e+00> : vector<256xf32>
    %13 = vector.multi_reduction <add>, %12, %cst_8 [0] : vector<41x256xf32> to vector<256xf32>
    %14 = vector.shape_cast %13 : vector<256xf32> to vector<1x256xf32>
    %15 = math.log %14 : vector<1x256xf32>
    %16 = tpu.iota {dimensions = array<i32: 0>} : vector<41x256xi32>
    %17 = vector.broadcast %6 : vector<1x256xi32> to vector<41x256xi32>
    %18 = arith.cmpi eq, %16, %17 : vector<41x256xi32>
    %cst_9 = arith.constant 0.000000e+00 : f32
    %19 = vector.broadcast %cst_9 : f32 to vector<41x256xf32>
    %20 = arith.select %18, %11, %19 : vector<41x256xi1>, vector<41x256xf32>
    %cst_10 = arith.constant dense<0.000000e+00> : vector<256xf32>
    %21 = vector.multi_reduction <add>, %20, %cst_10 [0] : vector<41x256xf32> to vector<256xf32>
    %22 = vector.shape_cast %21 : vector<256xf32> to vector<1x256xf32>
    %cst_11 = arith.constant 0.000000e+00 : f32
    %23 = vector.shape_cast %7 : vector<41x1xf32> to vector<41x1xf32>
    %24 = vector.broadcast %23 : vector<41x1xf32> to vector<41x256xf32>
    %25 = vector.broadcast %cst_11 : f32 to vector<41x256xf32>
    %26 = arith.select %18, %24, %25 : vector<41x256xi1>, vector<41x256xf32>
    %cst_12 = arith.constant dense<0.000000e+00> : vector<256xf32>
    %27 = vector.multi_reduction <add>, %26, %cst_12 [0] : vector<41x256xf32> to vector<256xf32>
    %28 = vector.shape_cast %27 : vector<256xf32> to vector<1x256xf32>
    %29 = arith.subf %15, %22 : vector<1x256xf32>
    %30 = arith.mulf %29, %28 : vector<1x256xf32>
    %c0_13 = arith.constant 0 : index
    %c0_14 = arith.constant 0 : index
    %31 = vector.load %arg8[%c0_13, %c0_14] : memref<1x256xf32, #tpu.memory_space<vmem>>, vector<1x256xf32>
    %32 = arith.addf %31, %30 : vector<1x256xf32>
    %c0_15 = arith.constant 0 : index
    %c0_16 = arith.constant 0 : index
    %33 = vector.load %arg8[%c0_15, %c0_16] : memref<1x256xf32, #tpu.memory_space<vmem>>, vector<1x256xf32>
    tpu.vector_store %arg8[%c0_15, %c0_16], %32 {strides = array<i32>} : memref<1x256xf32, #tpu.memory_space<vmem>>, vector<1x256xf32>,
    %c0_17 = arith.constant 0 : index
    %c0_18 = arith.constant 0 : index
    %34 = vector.load %arg9[%c0_17, %c0_18] : memref<1x256xf32, #tpu.memory_space<vmem>>, vector<1x256xf32>
    %35 = arith.addf %34, %28 : vector<1x256xf32>
    %c0_19 = arith.constant 0 : index
    %c0_20 = arith.constant 0 : index
    %36 = vector.load %arg9[%c0_19, %c0_20] : memref<1x256xf32, #tpu.memory_space<vmem>>, vector<1x256xf32>
    tpu.vector_store %arg9[%c0_19, %c0_20], %35 {strides = array<i32>} : memref<1x256xf32, #tpu.memory_space<vmem>>, vector<1x256xf32>,
    %c0_i32_21 = arith.constant 0 : i32
    %37 = arith.cmpi eq, %arg2, %c0_i32_21 : i32
    %38 = arith.extui %37 : i1 to i32
    %c0_i32_22 = arith.constant 0 : i32
    %39 = arith.cmpi ne, %38, %c0_i32_22 : i32
    scf.if %39 {
      %c0_23 = arith.constant 0 : index
      %c0_24 = arith.constant 0 : index
      %40 = vector.load %arg8[%c0_23, %c0_24] : memref<1x256xf32, #tpu.memory_space<vmem>>, vector<1x256xf32>
      %41 = vector.shape_cast %40 : vector<1x256xf32> to vector<1x1x256xf32>
      %cst_25 = arith.constant dense<0.000000e+00> : vector<1xf32>
      %42 = vector.multi_reduction <add>, %41, %cst_25 [1, 2] : vector<1x1x256xf32> to vector<1xf32>
      %43 = vector.shape_cast %42 : vector<1xf32> to vector<1x1x1xf32>
      %44 = vector.extract %43[0, 0, 0] : f32 from vector<1x1x1xf32>
      %45 = vector.broadcast %44 : f32 to vector<1x1xf32>
      %c0_26 = arith.constant 0 : index
      %c0_27 = arith.constant 0 : index
      %c0_28 = arith.constant 0 : index
      %c0_29 = arith.constant 0 : index
      %46 = vector.load %arg6[%c0_26, %c0_27, %c0_28, %c0_29] : memref<1x1x1x1xf32, #tpu.memory_space<vmem>>, vector<1x1x1x1xf32>
      %47 = vector.shape_cast %46 : vector<1x1x1x1xf32> to vector<1x1xf32>
      %48 = vector.shape_cast %45 : vector<1x1xf32> to vector<1x1x1x1xf32>
      tpu.vector_store %arg6[%c0_26, %c0_27, %c0_28, %c0_29], %48 {strides = array<i32>} : memref<1x1x1x1xf32, #tpu.memory_space<vmem>>, vector<1x1x1x1xf32>,
      %c0_30 = arith.constant 0 : index
      %c0_31 = arith.constant 0 : index
      %49 = vector.load %arg9[%c0_30, %c0_31] : memref<1x256xf32, #tpu.memory_space<vmem>>, vector<1x256xf32>
      %50 = vector.shape_cast %49 : vector<1x256xf32> to vector<1x1x256xf32>
      %cst_32 = arith.constant dense<0.000000e+00> : vector<1xf32>
      %51 = vector.multi_reduction <add>, %50, %cst_32 [1, 2] : vector<1x1x256xf32> to vector<1xf32>
      %52 = vector.shape_cast %51 : vector<1xf32> to vector<1x1x1xf32>
      %53 = vector.extract %52[0, 0, 0] : f32 from vector<1x1x1xf32>
      %54 = vector.broadcast %53 : f32 to vector<1x1xf32>
      %c0_33 = arith.constant 0 : index
      %c0_34 = arith.constant 0 : index
      %c0_35 = arith.constant 0 : index
      %c0_36 = arith.constant 0 : index
      %55 = vector.load %arg7[%c0_33, %c0_34, %c0_35, %c0_36] : memref<1x1x1x1xf32, #tpu.memory_space<vmem>>, vector<1x1x1x1xf32>
      %56 = vector.shape_cast %55 : vector<1x1x1x1xf32> to vector<1x1xf32>
      %57 = vector.shape_cast %54 : vector<1x1xf32> to vector<1x1x1x1xf32>
      tpu.vector_store %arg7[%c0_33, %c0_34, %c0_35, %c0_36], %57 {strides = array<i32>} : memref<1x1x1x1xf32, #tpu.memory_space<vmem>>, vector<1x1x1x1xf32>,
    } else {
    }
    return
  }
  func.func @transform_0(%arg0: i32, %arg1: i32, %arg2: i32) -> (i32, i32, i32) {
    %c1_i32 = arith.constant 1 : i32
    %0 = arith.muli %arg1, %c1_i32 : i32
    %1 = arith.addi %0, %arg2 : i32
    %c0_i32 = arith.constant 0 : i32
    %c0_i32_0 = arith.constant 0 : i32
    return %arg0, %c0_i32, %1 : i32, i32, i32
  }
  func.func @transform_1(%arg0: i32, %arg1: i32, %arg2: i32) -> (i32, i32, i32) {
    %c1_i32 = arith.constant 1 : i32
    %0 = arith.muli %arg1, %c1_i32 : i32
    %1 = arith.addi %0, %arg2 : i32
    %c0_i32 = arith.constant 0 : i32
    %c0_i32_0 = arith.constant 0 : i32
    return %arg0, %c0_i32, %1 : i32, i32, i32
  }
  func.func @transform_2(%arg0: i32, %arg1: i32, %arg2: i32) -> (i32, i32) {
    %c0_i32 = arith.constant 0 : i32
    %c0_i32_0 = arith.constant 0 : i32
    %c0_i32_1 = arith.constant 0 : i32
    return %c0_i32, %c0_i32_0 : i32, i32
  }
  func.func @transform_3(%arg0: i32, %arg1: i32, %arg2: i32) -> (i32, i32, i32, i32) {
    %c0_i32 = arith.constant 0 : i32
    %c0_i32_0 = arith.constant 0 : i32
    %c0_i32_1 = arith.constant 0 : i32
    return %arg0, %arg1, %c0_i32, %c0_i32_0 : i32, i32, i32, i32
  }
  func.func @transform_4(%arg0: i32, %arg1: i32, %arg2: i32) -> (i32, i32, i32, i32) {
    %c0_i32 = arith.constant 0 : i32
    %c0_i32_0 = arith.constant 0 : i32
    %c0_i32_1 = arith.constant 0 : i32
    return %arg0, %arg1, %c0_i32, %c0_i32_0 : i32, i32, i32, i32
  }
}

</mosaic_0001>

<bundles_post_ra>
// kernel: seg_cross_entropy_loss.1
= control target key start
LH: loop header
LB: loop body
LE: loop exit
PB: predicated region body
PF: predicated region fallthrough
CT: control target
= control target key end

     0   :  { %s901_s15 = smov 0   ;;  %s903_s16 = smov 0   ;;  %s1160_s0 = inlined_call_operand.vmem [shape: f32[2,41,256], index: 0, kind: input, shape index: {}]   ;;  %s1161_s1 = inlined_call_operand.vmem [shape: s32[2,1,256], index: 1, kind: input, shape index: {}]   ;;  %s1162_s2 = inlined_call_operand.vmem [shape: f32[41,1], index: 2, kind: input, shape index: {}]   ;;  %s1163_s3 = inlined_call_operand.vmem [shape: f32[2,1,1,1], index: 3, kind: output, shape index: {0}]   ;;  %s1164_s4 = inlined_call_operand.vmem [shape: f32[2,1,1,1], index: 4, kind: output, shape index: {1}]  }
   0x1   :  { %s905_s17 = smov 0  }
   0x2 LB: > { %s34_s18 = sadd.s32 1, %s867_s16  ;;  %p782_p0 = scmp.ge.s32.totalorder %s871_s17, 1  ;;  %s871_s17 = sphi %s905_s17, %s15_s17   ;;  %s867_s16 = sphi %s903_s16, %s1168_s16   ;;  %s863_s15 = sphi %s901_s15, %s1167_s15  }
   0x3   : > { %p36_p1 = scmp.ge.s32.totalorder %s34_s18, 2  ;;  %p219_p2 = scmp.lt.s32.totalorder %s871_s17, 3 }
   0x5   : > { %s1170_s18 = smov (%p36_p1, %s34_s18), 0  ;;  %p220_p3 = pnand %p782_p0, %p219_p2 }
   0x6   : > { %p268_p4 = scmp.lt.s32.totalorder (!%p220_p3), %s863_s15, 1 }
   0x7   : > { %223 = sbr.rel (%p220_p3) target bundleno = 391 (0x187), region = 32 }
   0xc   : > { %v326_v0 = vld [vmem:[%s1162_s2 + $0x10] sm:$0xff]  ;;  %v324_v1 = vld [vmem:[%s1162_s2] sm:$0xff]  ;;  %v873_v2 = vmov 0   ;;  %v327_v3 = vld [vmem:[%s1162_s2 + $0x18] sm:$0xff]  ;;  %v305_v5 = vlaneseq  ;;  %s1172_s15 = smov (!%p268_p4, %s863_s15), 1  ;;  %v874_v9 = vmov 0.0  }
   0xd   : > { %820 = vset.pattern.permute.xlu1 %v873_v2  ;;  %819 = vset.pattern.permute.xlu0 %v873_v2  ;;  %v325_v4 = vld [vmem:[%s1162_s2 + $0x8] sm:$0xff]  ;;  %v328_v7 = vld [vmem:[%s1162_s2 + $0x20] sm:$0xff]  ;;  %s787_s5 = smul.u32 96, %s1172_s15  ;;  %vm333_vm1 = vcmask 1040384   ;;  %s784_s9 = sshll.u32 %s1172_s15, 1  ;;  %vm626_vm14 = vcmask 0  }
   0xe   : > { %494 = vperm.xlu1 %820, %v326_v0   ;;  %484 = vperm.xlu0 %819, %v324_v1   ;;  %v329_v6 = vld [vmem:[%s1162_s2 + $0x28] sm:$0x1]  ;;  %vm940_vm0 = vcmp.lt.s32.totalorder %v305_v5, 256  ;;  %s286_s12 = scalar_lea.vmem %s1161_s1, %s784_s9  ;;  %s294_s19 = scalar_lea.vmem %s1163_s3, %s1172_s15 }
   0xf   : > { %309 = vst.msk [vmem:[#allocation2] sm:$0x3] %vm940_vm0, %v874_v9  ;;  %310 = vst.msk [vmem:[#allocation3] sm:$0x3] %vm940_vm0, %v874_v9  ;;  %s275_s8 = scalar_lea.vmem %s1160_s0, %s787_s5  ;;  %s300_s23 = scalar_lea.vmem %s1164_s4, %s1172_s15 }
  0x10   : > { %v311_v10 = vld [vmem:[%s275_s8] sm:$0xff]  ;;  %v312_v11 = vld [vmem:[%s275_s8 + $0x8] sm:$0xff]  ;;  %v313_v12 = vld [vmem:[%s275_s8 + $0x10] sm:$0xff] }
  0x11   : > { %v314_v13 = vld [vmem:[%s275_s8 + $0x18] sm:$0xff]  ;;  %v315_v14 = vld [vmem:[%s275_s8 + $0x20] sm:$0xff]  ;;  %v317_v15 = vld [vmem:[%s275_s8 + $0x30] sm:$0xff] }
  0x12   : > { %499 = vperm.xlu1 %820, %v327_v3   ;;  %489 = vperm.xlu0 %819, %v325_v4   ;;  %v316_v16 = vld [vmem:[%s275_s8 + $0x28] sm:$0xff]  ;;  %v318_v17 = vld [vmem:[%s275_s8 + $0x38] sm:$0xff]  ;;  %v321_v18 = vld [vmem:[%s275_s8 + $0x50] sm:$0x1]  ;;  %v330_v20 = vmax.f32 %v311_v10, %v315_v14  ;;  %v331_v21 = vmax.f32 %v313_v12, %v317_v15 }
  0x13   : > { %v322_v19 = vld [vmem:[%s275_s8 + $0x58] sm:$0x1]  ;;  %v319_v22 = vld [vmem:[%s275_s8 + $0x40] sm:$0xff]  ;;  %v334_v23 = vsel %vm333_vm1, %v321_v18, -inf  ;;  %v343_v24 = vmax.f32 %v312_v11, %v316_v16  ;;  %v344_v25 = vmax.f32 %v314_v13, %v318_v17  ;;  %v320_v26 = vld [vmem:[%s275_s8 + $0x48] sm:$0xff] }
  0x14   : > { %v346_v27 = vsel %vm333_vm1, %v322_v19, -inf  ;;  %v332_v28 = vmax.f32 %v330_v20, %v319_v22  ;;  %v335_v29 = vmax.f32 %v331_v21, %v334_v23  ;;  %v323_v23 = vld [vmem:[%s286_s12] sm:$0x3] }
  0x15   : > { %v345_v30 = vmax.f32 %v343_v24, %v320_v26  ;;  %v347_v31 = vmax.f32 %v344_v25, %v346_v27 }
  0x16   : > { %509 = vperm.xlu1 %820, %v329_v6   ;;  %504 = vperm.xlu0 %819, %v328_v7   ;;  %v336_v32 = vmax.f32 %v332_v28, %v335_v29 }
  0x17   : > { %v348_v33 = vmax.f32 %v345_v30, %v347_v31 }
  0x18   : > { %v337_v34 = vrot.slane %v336_v32, 4 }
  0x19   : > { %v349_v35 = vrot.slane %v348_v33, 4 }
  0x1a   : > { %v338_v36 = vmax.f32 %v336_v32, %v337_v34 }
  0x1b   : > { %v350_v37 = vmax.f32 %v348_v33, %v349_v35 }
  0x1c   : > { %v339_v38 = vrot.slane %v338_v36, 2 }
  0x1d   : > { %v351_v39 = vrot.slane %v350_v37, 2 }
  0x1e   : > { %v340_v40 = vmax.f32 %v338_v36, %v339_v38 }
  0x1f   : > { %v352_v41 = vmax.f32 %v350_v37, %v351_v39 }
  0x20   : > { %v341_v42 = vrot.slane %v340_v40, 1 }
  0x21   : > { %v353_v43 = vrot.slane %v352_v41, 1 }
  0x22   : > { %v342_v44 = vmax.f32 %v340_v40, %v341_v42 }
  0x23   : > { %v354_v45 = vmax.f32 %v352_v41, %v353_v43 }
  0x24   : > { %v954_v46 = vsub.f32 %v311_v10, %v342_v44  ;;  %v958_v48 = vsub.f32 %v313_v12, %v342_v44  ;;  %v964_v52 = vsub.f32 %v315_v14, %v342_v44  ;;  %v971_v57 = vsub.f32 %v317_v15, %v342_v44 }
  0x25   : > { %v956_v47 = vsub.f32 %v312_v11, %v354_v45  ;;  %v960_v49 = vsub.f32 %v314_v13, %v354_v45  ;;  %v967_v54 = vsub.f32 %v316_v16, %v354_v45  ;;  %v974_v59 = vsub.f32 %v318_v17, %v354_v45 }
  0x26   : > { %v367_v50 = vmul.f32 1.442695, %v954_v46  ;;  %v371_v53 = vmul.f32 1.442695, %v958_v48  ;;  %v375_v56 = vmul.f32 1.442695, %v964_v52  ;;  %v976_v60 = vsub.f32 %v321_v18, %v342_v44 }
  0x27   : > { %v369_v51 = vmul.f32 1.442695, %v956_v47  ;;  %v373_v55 = vmul.f32 1.442695, %v960_v49  ;;  %v377_v58 = vmul.f32 1.442695, %v967_v54  ;;  %v979_v62 = vsub.f32 %v319_v22, %v342_v44 }
  0x28   : > { %821 = vpow2.f32 %v367_v50  ;;  %v379_v61 = vmul.f32 1.442695, %v971_v57  ;;  %v381_v63 = vmul.f32 1.442695, %v974_v59  ;;  %v982_v0 = vsub.f32 %v320_v26, %v354_v45 }
  0x29   : > { %823 = vpow2.f32 %v369_v51  ;;  %v984_v1 = vsub.f32 %v322_v19, %v354_v45  ;;  %v387_v2 = vmul.f32 1.442695, %v976_v60  ;;  %v383_v3 = vmul.f32 1.442695, %v979_v62 }
  0x2a   : > { %825 = vpow2.f32 %v371_v53  ;;  %v385_v4 = vmul.f32 1.442695, %v982_v0  ;;  %v992_v16 = vshrl.u32 %v305_v5, 7 }
  0x2b   : > { %827 = vpow2.f32 %v373_v55  ;;  %v389_v6 = vmul.f32 1.442695, %v984_v1 }
  0x2c   : > { %829 = vpow2.f32 %v375_v56  ;;  %v998_v21 = vsub.s32 0, %v992_v16  ;;  %v1001_v24 = vsub.s32 1, %v992_v16  ;;  %v1004_v28 = vadd.s32 8, %v992_v16 }
  0x2d   : > { %831 = vpow2.f32 %v377_v58  ;;  %v1014_v35 = vadd.s32 16, %v992_v16  ;;  %v1046_v43 = vadd.s32 24, %v992_v16  ;;  %v1057_v50 = vadd.s32 32, %v992_v16 }
  0x2e   : > { %833 = vpow2.f32 %v379_v61  ;;  %v1007_v30 = vrot.slane %v323_v23, %v998_v21  ;;  %v1010_v31 = vrot.slane %v323_v23, %v1001_v24  ;;  %v425_v51 = vadd.s32 40, %v992_v16 }
  0x2f   : > { %835 = vpow2.f32 %v381_v63 }
  0x30   : > { %837 = vpow2.f32 %v387_v2  ;;  %vm436_vm2 = vcmp.eq.s32.totalorder %v1004_v28, %v1007_v30  ;;  %vm437_vm3 = vcmp.eq.s32.totalorder %v1004_v28, %v1010_v31  ;;  %vm434_vm4 = vcmp.eq.s32.totalorder %v992_v16, %v1007_v30 }
  0x31   : > { %839 = vpow2.f32 %v383_v3  ;;  %vm435_vm5 = vcmp.eq.s32.totalorder %v992_v16, %v1010_v31  ;;  %v446_v37 = vsel %vm434_vm4, %v954_v46, 0.0  ;;  %v448_v40 = vsel %vm436_vm2, %v958_v48, 0.0 }
  0x32   : > { %841 = vpow2.f32 %v385_v4  ;;  %v447_v39 = vsel %vm435_vm5, %v956_v47, 0.0  ;;  %v449_v41 = vsel %vm437_vm3, %v960_v49, 0.0  ;;  %vm438_vm6 = vcmp.eq.s32.totalorder %v1014_v35, %v1007_v30 }
  0x33   : > { %843 = vpow2.f32 %v389_v6  ;;  %vm439_vm7 = vcmp.eq.s32.totalorder %v1014_v35, %v1010_v31  ;;  %v458_v44 = vadd.f32 %v448_v40, %v446_v37  ;;  %v470_v45 = vadd.f32 %v449_v41, %v447_v39 }
  0x34   : > { %v450_v47 = vsel %vm438_vm6, %v964_v52, 0.0  ;;  %v451_v48 = vsel %vm439_vm7, %v967_v54, 0.0  ;;  %vm440_vm8 = vcmp.eq.s32.totalorder %v1046_v43, %v1007_v30  ;;  %vm441_vm9 = vcmp.eq.s32.totalorder %v1046_v43, %v1010_v31 }
  0x35   : > { %v822_v7 = vpop.eup %821  ;;  %v459_v53 = vadd.f32 %v458_v44, %v450_v47  ;;  %v471_v55 = vadd.f32 %v470_v45, %v451_v48  ;;  %v452_v54 = vsel %vm440_vm8, %v971_v57, 0.0  ;;  %v453_v56 = vsel %vm441_vm9, %v974_v59, 0.0 }
  0x36   : > { %v824_v9 = vpop.eup %823  ;;  %vm442_vm10 = vcmp.eq.s32.totalorder %v1057_v50, %v1007_v30  ;;  %vm443_vm11 = vcmp.eq.s32.totalorder %v1057_v50, %v1010_v31  ;;  %vm444_vm12 = vcmp.eq.s32.totalorder %v425_v51, %v1007_v30  ;;  %vm445_vm13 = vcmp.eq.s32.totalorder %v425_v51, %v1010_v31 }
  0x37   : > { %v826_v10 = vpop.eup %825  ;;  %v460_v63 = vadd.f32 %v459_v53, %v452_v54  ;;  %v472_v2 = vadd.f32 %v471_v55, %v453_v56  ;;  %v454_v59 = vsel %vm442_vm10, %v979_v62, 0.0  ;;  %v455_v3 = vsel %vm443_vm11, %v982_v0, 0.0 }
  0x38   : > { %v828_v11 = vpop.eup %827  ;;  %v391_v12 = vadd.f32 %v826_v10, %v822_v7  ;;  %v456_v4 = vsel %vm444_vm12, %v976_v60, 0.0  ;;  %v457_v6 = vsel %vm445_vm13, %v984_v1, 0.0  ;;  %v875_v30 = vmov 1966171168  }
  0x39   : > { %v830_v13 = vpop.eup %829  ;;  %v403_v14 = vadd.f32 %v828_v11, %v824_v9  ;;  %v461_v9 = vadd.f32 %v460_v63, %v454_v59  ;;  %v473_v10 = vadd.f32 %v472_v2, %v455_v3  ;;  %v462_v11 = vsel %vm333_vm1, %v456_v4, 0.0 }
  0x3a   : > { %v832_v15 = vpop.eup %831  ;;  %v392_v17 = vadd.f32 %v830_v13, %v391_v12  ;;  %v474_v62 = vsel %vm333_vm1, %v457_v6, 0.0  ;;  %v557_v6 = vunpack.c.l.s4 %v875_v30 }
  0x3b   : > { %v834_v18 = vpop.eup %833  ;;  %v404_v19 = vadd.f32 %v832_v15, %v403_v14  ;;  %v463_v14 = vadd.f32 %v462_v11, %v461_v9  ;;  %v475_v15 = vadd.f32 %v474_v62, %v473_v10 }
  0x3c   : > { %v836_v20 = vpop.eup %835  ;;  %v393_v25 = vadd.f32 %v834_v18, %v392_v17 }
  0x3d   : > { %v838_v22 = vpop.eup %837  ;;  %v405_v5 = vadd.f32 %v836_v20, %v404_v19  ;;  %v464_v18 = vrot.slane %v463_v14, 4  ;;  %v476_v19 = vrot.slane %v475_v15, 4 }
  0x3e   : > { %v840_v26 = vpop.eup %839  ;;  %v395_v33 = vsel %vm333_vm1, %v838_v22, 0.0 }
  0x3f   : > { %v842_v27 = vpop.eup %841  ;;  %v394_v32 = vadd.f32 %v840_v26, %v393_v25  ;;  %v465_v1 = vadd.f32 %v464_v18, %v463_v14  ;;  %v477_v23 = vadd.f32 %v476_v19, %v475_v15 }
  0x40   : > { %v844_v29 = vpop.eup %843  ;;  %v406_v34 = vadd.f32 %v842_v27, %v405_v5 }
  0x41   : > { %v407_v36 = vsel %vm333_vm1, %v844_v29, 0.0  ;;  %v396_v38 = vadd.f32 %v395_v33, %v394_v32  ;;  %v478_v39 = vrot.slane %v477_v23, 2 }
  0x42   : > { %v408_v42 = vadd.f32 %v407_v36, %v406_v34 }
  0x43   : > { %v397_v46 = vrot.slane %v396_v38, 4  ;;  %v479_v53 = vadd.f32 %v478_v39, %v477_v23 }
  0x44   : > { %v409_v49 = vrot.slane %v408_v42, 4 }
  0x45   : > { %v398_v52 = vadd.f32 %v397_v46, %v396_v38  ;;  %v466_v38 = vrot.slane %v465_v1, 2  ;;  %v480_v2 = vrot.slane %v479_v53, 1 }
  0x46   : > { %v410_v58 = vadd.f32 %v409_v49, %v408_v42 }
  0x47   : > { %v399_v61 = vrot.slane %v398_v52, 2  ;;  %v467_v49 = vadd.f32 %v466_v38, %v465_v1  ;;  %v481_v50 = vadd.f32 %v480_v2, %v479_v53 }
  0x48   : > { %v411_v57 = vrot.slane %v410_v58, 2 }
  0x49   : > { %v400_v7 = vadd.f32 %v399_v61, %v398_v52  ;;  %v468_v63 = vrot.slane %v467_v49, 1 }
  0x4a   : > { %v412_v12 = vadd.f32 %v411_v57, %v410_v58 }
  0x4b   : > { %v401_v13 = vrot.slane %v400_v7, 1  ;;  %v469_v31 = vadd.f32 %v468_v63, %v467_v49 }
  0x4c   : > { %v413_v0 = vrot.slane %v412_v12, 1 }
  0x4d   : > { %v402_v17 = vadd.f32 %v401_v13, %v400_v7  ;;  %v558_v13 = vunpack.c.0.s8 %v557_v6 }
  0x4e   : > { %v414_v22 = vadd.f32 %v413_v0, %v412_v12 }
  0x4f   : > { %845 = vlog2.f32 %v402_v17 }
  0x50   : > { %847 = vlog2.f32 %v414_v22  ;;  %v561_v22 = vsub.s32 %v558_v13, %v992_v16 }
  0x5c   : > { %v846_v57 = vpop.eup %845 }
  0x5d   : > { %v848_v4 = vpop.eup %847  ;;  %v416_v10 = vmul.f32 0.6931472, %v846_v57 }
  0x5e   : > { %v418_v11 = vmul.f32 0.6931472, %v848_v4 }
  0x5f   : > { %v548_v18 = vsub.f32 %v416_v10, %v469_v31 }
  0x60   : > { %v549_v19 = vsub.f32 %v418_v11, %v481_v50 }
  0x89   : > { %v495_v60 = vpop.permute.xlu1 %494  ;;  %v485_v20 = vpop.permute.xlu0 %484 }
  0x8a   : > { %v512_v5 = vsel %vm434_vm4, %v485_v20, 0.0  ;;  %v513_v27 = vsel %vm435_vm5, %v485_v20, 0.0  ;;  %v516_v36 = vsel %vm438_vm6, %v495_v60, 0.0  ;;  %v517_v37 = vsel %vm439_vm7, %v495_v60, 0.0 }
  0x8d   : > { %v500_v25 = vpop.permute.xlu1 %499  ;;  %v490_v26 = vpop.permute.xlu0 %489 }
  0x8e   : > { %v514_v29 = vsel %vm436_vm2, %v490_v26, 0.0  ;;  %v515_v32 = vsel %vm437_vm3, %v490_v26, 0.0  ;;  %v518_v28 = vsel %vm440_vm8, %v500_v25, 0.0  ;;  %v519_v45 = vsel %vm441_vm9, %v500_v25, 0.0 }
  0x8f   : > { %v524_v33 = vadd.f32 %v514_v29, %v512_v5  ;;  %v536_v34 = vadd.f32 %v515_v32, %v513_v27  ;;  %v577_v27 = vld [vmem:[#allocation3] sm:$0x3] }
  0x91   : > { %v525_v40 = vadd.f32 %v524_v33, %v516_v36  ;;  %v537_v41 = vadd.f32 %v536_v34, %v517_v37  ;;  %v510_v42 = vpop.permute.xlu1 %509  ;;  %v505_v44 = vpop.permute.xlu0 %504  ;;  %v552_v33 = vld [vmem:[#allocation2] sm:$0x3] }
  0x92   : > { %v522_v46 = vsel %vm444_vm12, %v510_v42, 0.0  ;;  %v523_v35 = vsel %vm445_vm13, %v510_v42, 0.0  ;;  %v520_v55 = vsel %vm442_vm10, %v505_v44, 0.0  ;;  %v521_v52 = vsel %vm443_vm11, %v505_v44, 0.0 }
  0x93   : > { %v526_v47 = vadd.f32 %v525_v40, %v518_v28  ;;  %v538_v48 = vadd.f32 %v537_v41, %v519_v45  ;;  %v528_v56 = vsel %vm333_vm1, %v522_v46, 0.0  ;;  %v540_v58 = vsel %vm333_vm1, %v523_v35, 0.0 }
  0x95   : > { %v527_v43 = vadd.f32 %v526_v47, %v520_v55  ;;  %v539_v54 = vadd.f32 %v538_v48, %v521_v52 }
  0x97   : > { %v529_v51 = vadd.f32 %v528_v56, %v527_v43  ;;  %v541_v61 = vadd.f32 %v540_v58, %v539_v54 }
  0x99   : > { %v530_v59 = vrot.slane %v529_v51, 4  ;;  %v542_v3 = vrot.slane %v541_v61, 4 }
  0x9b   : > { %v531_v7 = vadd.f32 %v530_v59, %v529_v51  ;;  %v543_v9 = vadd.f32 %v542_v3, %v541_v61 }
  0x9d   : > { %v532_v62 = vrot.slane %v531_v7, 2  ;;  %v544_v12 = vrot.slane %v543_v9, 2 }
  0x9f   : > { %v533_v14 = vadd.f32 %v532_v62, %v531_v7  ;;  %v545_v15 = vadd.f32 %v544_v12, %v543_v9 }
  0xa1   : > { %v534_v0 = vrot.slane %v533_v14, 1  ;;  %v546_v17 = vrot.slane %v545_v15, 1 }
  0xa3   : > { %v535_v60 = vadd.f32 %v534_v0, %v533_v14  ;;  %v547_v20 = vadd.f32 %v546_v17, %v545_v15 }
  0xa5   : > { %v550_v1 = vmul.f32 %v548_v18, %v535_v60  ;;  %v551_v23 = vmul.f32 %v549_v19, %v547_v20  ;;  %v580_v25 = vcombine.low %v535_v60, %v547_v20 }
  0xa7   : > { %v555_v26 = vcombine.low %v550_v1, %v551_v23  ;;  %v587_v5 = vrot.slane %v580_v25, %v561_v22 }
  0xa9   : > { %v562_v29 = vrot.slane %v555_v26, %v561_v22  ;;  %v594_v32 = vrot.slane %v587_v5, %v561_v22 }
  0xab   : > { %v569_v34 = vrot.slane %v562_v29, %v561_v22  ;;  %v596_v36 = vadd.f32 %v594_v32, %v577_v27 }
  0xad   : > { %v571_v37 = vadd.f32 %v569_v34, %v552_v33  ;;  %597 = vst.msk [vmem:[#allocation3] sm:$0x3] %vm940_vm0, %v596_v36 }
  0xaf   : > { %576 = vst.msk [vmem:[#allocation2] sm:$0x3] %vm940_vm0, %v571_v37 }
  0xb4   : > { %v628_v38 = vld [vmem:[#allocation3] sm:$0x3] }
  0xb5   : > { %v633_v16 = vrot.slane %v628_v38, %v998_v21  ;;  %v637_v39 = vrot.slane %v628_v38, %v1001_v24 }
  0xb6   : > { %v601_v40 = vld [vmem:[#allocation2] sm:$0x3] }
  0xb7   : > { %v640_v41 = vsel %vm333_vm1, %v633_v16, 0.0  ;;  %v641_v42 = vsel %vm333_vm1, %v637_v39, 0.0  ;;  %v606_v44 = vrot.slane %v601_v40, %v998_v21  ;;  %v610_v28 = vrot.slane %v601_v40, %v1001_v24 }
  0xb8   : > { %v642_v45 = vadd.f32 %v641_v42, %v640_v41 }
  0xb9   : > { %v613_v46 = vsel %vm333_vm1, %v606_v44, 0.0  ;;  %v614_v8 = vsel %vm333_vm1, %v610_v28, 0.0 }
  0xba   : > { %643 = vadd.xlane.f32.xlu1 %v642_v45  ;;  %v615_v35 = vadd.f32 %v614_v8, %v613_v46 }
  0xbc   : > { %616 = vadd.xlane.f32.xlu0 %v615_v35 }
 0x143   : > { %v644_v47 = vpop.xlane.xlu1 %643 }
 0x144   : > { %v645_v48 = vrot.slane %v644_v47, 4 }
 0x145   : > { %v617_v49 = vpop.xlane.xlu0 %616 }
 0x146   : > { %v646_v53 = vadd.f32 %v645_v48, %v644_v47  ;;  %v618_v55 = vrot.slane %v617_v49, 4 }
 0x148   : > { %v647_v52 = vrot.slane %v646_v53, 2  ;;  %v619_v43 = vadd.f32 %v618_v55, %v617_v49 }
 0x14a   : > { %v648_v21 = vadd.f32 %v647_v52, %v646_v53  ;;  %v620_v54 = vrot.slane %v619_v43, 2 }
 0x14c   : > { %v621_v24 = vadd.f32 %v620_v54, %v619_v43  ;;  %v649_v56 = vrot.slane %v648_v21, 1 }
 0x14e   : > { %v622_v58 = vrot.slane %v621_v24, 1  ;;  %v650_v61 = vadd.f32 %v649_v56, %v648_v21 }
 0x150   : > { %v623_v51 = vadd.f32 %v622_v58, %v621_v24 }
 0x152   : > { %788 = vpush %v623_v51 }
 0x153   : > { %790 = vpush %v650_v61 }
 0x183   : > { %s789_s20 = spop %788 }
 0x184   : > { %v625_v63 = vstv %s789_s20  ;;  %s791_s24 = spop %790 }
 0x185   : > { %627 = vst.msk [vmem:[%s294_s19] sm:$0x1] %vm626_vm14, %v625_v63  ;;  %v652_v2 = vstv %s791_s24 }
 0x186   : > { %653 = vst.msk [vmem:[%s300_s23] sm:$0x1] %vm626_vm14, %v652_v2 }
 0x187 PF: > { %s15_s17 = sadd.s32 1, %s871_s17   ;;  %s1167_s15 = smov %s867_s16 }
 0x188   : > { %p12_p5 = scmp.ge.s32.totalorder %s15_s17, 4   ;;  %s1168_s16 = smov %s1170_s18 }
 0x18a   :  { %14 = sbr.rel (!%p12_p5) target bundleno = 2 (0x2), region = 85 }

</bundles_post_ra>
